<compile_context>
chip_gen: v5e
topology: v5e:2x2
jax: 0.10.0
libtpu: 0.0.40
codegen_flags: <defaults>
</compile_context>

<pallas_src>
import jax
import jax.numpy as jnp
from jax.experimental import pallas as pl
from jax.experimental.pallas import tpu as pltpu

# logical sizes from the PyTorch module
IN_F = 1
HID_F = 6
OUT_F = 1

LANES = 128      # batch elements laid across lanes (last dim)
SUBLANES = 8     # (8, 128) tiling constraint on the second-to-last dim
MAX_TB = 512     # rows per grid step: 512*128*4B = 256 KiB per buffer (VMEM-safe on v7x)


def mlp_kernel(p_ref, x_ref, o_ref):
    # p_ref: SMEM (19,) f32 = [w1(6), b1(6), w2(6), b2(1)]
    # x_ref / o_ref: VMEM (TB, 128) f32 — batch laid lane-dense
    x = x_ref[...]
    acc = jnp.zeros_like(x)
    # fully unrolled: 6 x (FMA + relu + FMA) on the VPU, scalars from SMEM
    for j in range(HID_F):
        h = jnp.maximum(x * p_ref[j] + p_ref[HID_F + j], 0.0)
        acc = acc + h * p_ref[2 * HID_F + j]
    o_ref[...] = acc + p_ref[3 * HID_F]


def pack_params(w1, b1, w2, b2):
    """Pack the 19 real parameters once at init (hoisted out of the forward path)."""
    return jnp.concatenate([
        w1.reshape(-1).astype(jnp.float32),   # fc1.weight (6,1) -> (6,)
        b1.reshape(-1).astype(jnp.float32),   # fc1.bias          (6,)
        w2.reshape(-1).astype(jnp.float32),   # fc3.weight (1,6) -> (6,)
        b2.reshape(-1).astype(jnp.float32),   # fc3.bias          (1,)
    ])


def _round_up(a, b):
    return -(-a // b) * b


def net_forward(x, params):
    """x: (N, 1) float32, params: packed (19,) float32 -> (N, 1) float32.

    Same semantics as Net.forward. Note: for tiny N (a few elements) the
    pallas_call launch overhead dominates; this kernel is meant for realistic
    batch sizes where the lane-dense streaming layout pays off.
    """
    n = x.shape[0]
    flat = x.reshape(-1).astype(jnp.float32)          # IN_F == 1

    rows = _round_up(n, LANES) // LANES               # lane-dense row count
    tb = min(MAX_TB, _round_up(rows, SUBLANES))       # rows per grid step (multiple of 8)
    padded_rows = _round_up(rows, tb)
    total = padded_rows * LANES

    x2d = jnp.zeros((total,), jnp.float32).at[:n].set(flat)
    x2d = x2d.reshape(padded_rows, LANES)

    out2d = pl.pallas_call(
        mlp_kernel,
        out_shape=jax.ShapeDtypeStruct((padded_rows, LANES), jnp.float32),
        grid_spec=pltpu.PrefetchScalarGridSpec(
            num_scalar_prefetch=0,
            grid=(padded_rows // tb,),
            in_specs=[
                pl.BlockSpec(memory_space=pltpu.MemorySpace.SMEM),   # 19 scalars
                pl.BlockSpec((tb, LANES), lambda i: (i, 0)),
            ],
            out_specs=pl.BlockSpec((tb, LANES), lambda i: (i, 0)),
        ),
        compiler_params=pltpu.CompilerParams(
            # batch tiles are independent -> shard grid across TCs on v7x
            dimension_semantics=("parallel",)),
    )(params, x2d)

    # padded tail positions hold garbage (b2 + sum w2*relu(b1)); slice them off
    return out2d.reshape(-1)[:n].reshape(n, OUT_F)


def init_params(key):
    """Deterministic init mimicking PyTorch Linear default U(-1/sqrt(fan_in), 1/sqrt(fan_in))."""
    k1, k2, k3, k4 = jax.random.split(key, 4)
    bound1 = 1.0 / jnp.sqrt(IN_F)
    bound2 = 1.0 / jnp.sqrt(HID_F)
    w1 = jax.random.uniform(k1, (HID_F, IN_F), jnp.float32, -bound1, bound1)
    b1 = jax.random.uniform(k2, (HID_F,), jnp.float32, -bound1, bound1)
    w2 = jax.random.uniform(k3, (OUT_F, HID_F), jnp.float32, -bound2, bound2)
    b2 = jax.random.uniform(k4, (OUT_F,), jnp.float32, -bound2, bound2)
    return w1, b1, w2, b2


def ref_forward(x, w1, b1, w2, b2):
    # exact elementwise reference (no MXU precision surprises)
    h = jnp.maximum(x * w1[:, 0][None, :] + b1[None, :], 0.0)        # (N, 6)
    return (h * w2[0][None, :]).sum(axis=1, keepdims=True) + b2[None, :]


if __name__ == "__main__":
    key = jax.random.PRNGKey(0)
    pkey, xkey = jax.random.split(key)

    w1, b1, w2, b2 = init_params(pkey)
    params = pack_params(w1, b1, w2, b2)      # packed once, reused per call

    # small batch matching Linear(1, 6) expectations: (N, 1)
    N = 8
    x = jax.random.normal(xkey, (N, IN_F), jnp.float32)
    out = jax.block_until_ready(net_forward(x, params))
    ref = ref_forward(x, w1, b1, w2, b2)
    assert out.shape == (N, OUT_F)
    assert jnp.allclose(out, ref, atol=1e-5, rtol=1e-5)

    # second check exercising the multi-block (grid > 1), pipelined path
    N2 = 70_000
    x2 = jax.random.normal(jax.random.PRNGKey(1), (N2, IN_F), jnp.float32)
    out2 = jax.block_until_ready(net_forward(x2, params))
    ref2 = ref_forward(x2, w1, b1, w2, b2)
    assert jnp.allclose(out2, ref2, atol=1e-5, rtol=1e-5)

    print("KERNEL_OK")
</pallas_src>

<mosaic_0001>
module attributes {stable_mosaic.version = 11 : i64} {
  func.func @mlp_kernel(%arg0: i32, %arg1: memref<19xf32, #tpu.memory_space<smem>>, %arg2: memref<8x128xf32, #tpu.memory_space<vmem>>, %arg3: memref<8x128xf32, #tpu.memory_space<vmem>>) attributes {dimension_semantics = [#tpu.dimension_semantics<parallel>], iteration_bounds = array<i64: 1>, scalar_prefetch = 0 : i64, scratch_operands = 0 : i64, tpu.core_type = #tpu.core_type<tc>, window_params = [{transform_indices = @transform_0, window_bounds = array<i64: 19>}, {transform_indices = @transform_1, window_bounds = array<i64: 8, 128>}, {transform_indices = @transform_2, window_bounds = array<i64: 8, 128>}]} {
    %c0 = arith.constant 0 : index
    %c0_0 = arith.constant 0 : index
    %0 = vector.load %arg2[%c0, %c0_0] : memref<8x128xf32, #tpu.memory_space<vmem>>, vector<8x128xf32>
    %cst = arith.constant 0.000000e+00 : f32
    %1 = vector.broadcast %cst : f32 to vector<8x128xf32>
    %c0_1 = arith.constant 0 : index
    %2 = memref.load %arg1[%c0_1] : memref<19xf32, #tpu.memory_space<smem>>
    %3 = vector.broadcast %2 : f32 to vector<8x128xf32>
    %4 = arith.mulf %0, %3 : vector<8x128xf32>
    %c6 = arith.constant 6 : index
    %5 = memref.load %arg1[%c6] : memref<19xf32, #tpu.memory_space<smem>>
    %6 = vector.broadcast %5 : f32 to vector<8x128xf32>
    %7 = arith.addf %4, %6 : vector<8x128xf32>
    %cst_2 = arith.constant 0.000000e+00 : f32
    %8 = vector.broadcast %cst_2 : f32 to vector<8x128xf32>
    %9 = arith.maximumf %7, %8 : vector<8x128xf32>
    %c12 = arith.constant 12 : index
    %10 = memref.load %arg1[%c12] : memref<19xf32, #tpu.memory_space<smem>>
    %11 = vector.broadcast %10 : f32 to vector<8x128xf32>
    %12 = arith.mulf %9, %11 : vector<8x128xf32>
    %13 = arith.addf %1, %12 : vector<8x128xf32>
    %c1 = arith.constant 1 : index
    %14 = memref.load %arg1[%c1] : memref<19xf32, #tpu.memory_space<smem>>
    %15 = vector.broadcast %14 : f32 to vector<8x128xf32>
    %16 = arith.mulf %0, %15 : vector<8x128xf32>
    %c7 = arith.constant 7 : index
    %17 = memref.load %arg1[%c7] : memref<19xf32, #tpu.memory_space<smem>>
    %18 = vector.broadcast %17 : f32 to vector<8x128xf32>
    %19 = arith.addf %16, %18 : vector<8x128xf32>
    %cst_3 = arith.constant 0.000000e+00 : f32
    %20 = vector.broadcast %cst_3 : f32 to vector<8x128xf32>
    %21 = arith.maximumf %19, %20 : vector<8x128xf32>
    %c13 = arith.constant 13 : index
    %22 = memref.load %arg1[%c13] : memref<19xf32, #tpu.memory_space<smem>>
    %23 = vector.broadcast %22 : f32 to vector<8x128xf32>
    %24 = arith.mulf %21, %23 : vector<8x128xf32>
    %25 = arith.addf %13, %24 : vector<8x128xf32>
    %c2 = arith.constant 2 : index
    %26 = memref.load %arg1[%c2] : memref<19xf32, #tpu.memory_space<smem>>
    %27 = vector.broadcast %26 : f32 to vector<8x128xf32>
    %28 = arith.mulf %0, %27 : vector<8x128xf32>
    %c8 = arith.constant 8 : index
    %29 = memref.load %arg1[%c8] : memref<19xf32, #tpu.memory_space<smem>>
    %30 = vector.broadcast %29 : f32 to vector<8x128xf32>
    %31 = arith.addf %28, %30 : vector<8x128xf32>
    %cst_4 = arith.constant 0.000000e+00 : f32
    %32 = vector.broadcast %cst_4 : f32 to vector<8x128xf32>
    %33 = arith.maximumf %31, %32 : vector<8x128xf32>
    %c14 = arith.constant 14 : index
    %34 = memref.load %arg1[%c14] : memref<19xf32, #tpu.memory_space<smem>>
    %35 = vector.broadcast %34 : f32 to vector<8x128xf32>
    %36 = arith.mulf %33, %35 : vector<8x128xf32>
    %37 = arith.addf %25, %36 : vector<8x128xf32>
    %c3 = arith.constant 3 : index
    %38 = memref.load %arg1[%c3] : memref<19xf32, #tpu.memory_space<smem>>
    %39 = vector.broadcast %38 : f32 to vector<8x128xf32>
    %40 = arith.mulf %0, %39 : vector<8x128xf32>
    %c9 = arith.constant 9 : index
    %41 = memref.load %arg1[%c9] : memref<19xf32, #tpu.memory_space<smem>>
    %42 = vector.broadcast %41 : f32 to vector<8x128xf32>
    %43 = arith.addf %40, %42 : vector<8x128xf32>
    %cst_5 = arith.constant 0.000000e+00 : f32
    %44 = vector.broadcast %cst_5 : f32 to vector<8x128xf32>
    %45 = arith.maximumf %43, %44 : vector<8x128xf32>
    %c15 = arith.constant 15 : index
    %46 = memref.load %arg1[%c15] : memref<19xf32, #tpu.memory_space<smem>>
    %47 = vector.broadcast %46 : f32 to vector<8x128xf32>
    %48 = arith.mulf %45, %47 : vector<8x128xf32>
    %49 = arith.addf %37, %48 : vector<8x128xf32>
    %c4 = arith.constant 4 : index
    %50 = memref.load %arg1[%c4] : memref<19xf32, #tpu.memory_space<smem>>
    %51 = vector.broadcast %50 : f32 to vector<8x128xf32>
    %52 = arith.mulf %0, %51 : vector<8x128xf32>
    %c10 = arith.constant 10 : index
    %53 = memref.load %arg1[%c10] : memref<19xf32, #tpu.memory_space<smem>>
    %54 = vector.broadcast %53 : f32 to vector<8x128xf32>
    %55 = arith.addf %52, %54 : vector<8x128xf32>
    %cst_6 = arith.constant 0.000000e+00 : f32
    %56 = vector.broadcast %cst_6 : f32 to vector<8x128xf32>
    %57 = arith.maximumf %55, %56 : vector<8x128xf32>
    %c16 = arith.constant 16 : index
    %58 = memref.load %arg1[%c16] : memref<19xf32, #tpu.memory_space<smem>>
    %59 = vector.broadcast %58 : f32 to vector<8x128xf32>
    %60 = arith.mulf %57, %59 : vector<8x128xf32>
    %61 = arith.addf %49, %60 : vector<8x128xf32>
    %c5 = arith.constant 5 : index
    %62 = memref.load %arg1[%c5] : memref<19xf32, #tpu.memory_space<smem>>
    %63 = vector.broadcast %62 : f32 to vector<8x128xf32>
    %64 = arith.mulf %0, %63 : vector<8x128xf32>
    %c11 = arith.constant 11 : index
    %65 = memref.load %arg1[%c11] : memref<19xf32, #tpu.memory_space<smem>>
    %66 = vector.broadcast %65 : f32 to vector<8x128xf32>
    %67 = arith.addf %64, %66 : vector<8x128xf32>
    %cst_7 = arith.constant 0.000000e+00 : f32
    %68 = vector.broadcast %cst_7 : f32 to vector<8x128xf32>
    %69 = arith.maximumf %67, %68 : vector<8x128xf32>
    %c17 = arith.constant 17 : index
    %70 = memref.load %arg1[%c17] : memref<19xf32, #tpu.memory_space<smem>>
    %71 = vector.broadcast %70 : f32 to vector<8x128xf32>
    %72 = arith.mulf %69, %71 : vector<8x128xf32>
    %73 = arith.addf %61, %72 : vector<8x128xf32>
    %c18 = arith.constant 18 : index
    %74 = memref.load %arg1[%c18] : memref<19xf32, #tpu.memory_space<smem>>
    %75 = vector.broadcast %74 : f32 to vector<8x128xf32>
    %76 = arith.addf %73, %75 : vector<8x128xf32>
    %c0_8 = arith.constant 0 : index
    %c0_9 = arith.constant 0 : index
    %77 = vector.load %arg3[%c0_8, %c0_9] : memref<8x128xf32, #tpu.memory_space<vmem>>, vector<8x128xf32>
    tpu.vector_store %arg3[%c0_8, %c0_9], %76 {strides = array<i32>} : memref<8x128xf32, #tpu.memory_space<vmem>>, vector<8x128xf32>,
    return
  }
  func.func @transform_0(%arg0: i32) -> i32 {
    %c0_i32 = arith.constant 0 : i32
    %c0_i32_0 = arith.constant 0 : i32
    return %c0_i32 : i32
  }
  func.func @transform_1(%arg0: i32) -> (i32, i32) {
    %c0_i32 = arith.constant 0 : i32
    %c0_i32_0 = arith.constant 0 : i32
    return %arg0, %c0_i32 : i32, i32
  }
  func.func @transform_2(%arg0: i32) -> (i32, i32) {
    %c0_i32 = arith.constant 0 : i32
    %c0_i32_0 = arith.constant 0 : i32
    return %arg0, %c0_i32 : i32, i32
  }
}

</mosaic_0001>

<bundles_post_ra>
// kernel: tpu_custom_call.1
= control target key start
LH: loop header
LB: loop body
LE: loop exit
PB: predicated region body
PF: predicated region fallthrough
CT: control target
= control target key end

     0   :  { %7 = vsyncpa [#allocation5], 0  ;;  %s248_s0 = inlined_call_operand.hbm [shape: f32[19], index: 0, kind: input, shape index: {}]   ;;  %s249_s1 = inlined_call_operand.hbm [shape: f32[8,128], index: 1, kind: input, shape index: {}]   ;;  %s250_s2 = inlined_call_operand.hbm [shape: f32[8,128], index: 2, kind: output, shape index: {}]  }
   0x1   :  { %8 = vsyncpa [#allocation3], 0 }
   0x2   :  { %9 = vsyncpa [#allocation4], 0  ;;  %s15_s11 = sshll.u32 %s248_s0, 4  ;;  %s24_s14 = sshll.u32 %s249_s1, 4  ;;  %s16_s11 = int_to_ptr.hbm [resolvable:$true] %s15_s11  ;;  %s25_s14 = int_to_ptr.hbm [resolvable:$true] %s24_s14 }
   0x3   :  { %s215_s15 = smov [#allocation2]   ;;  %s216_s16 = smov [#allocation6]  }
   0x4   :  { %18 = dma.hbm_to_smem %s16_s11, 16, %s215_s15, [#allocation5]  }
   0x5   :  { %s26_s17 = sshll.u32 %s216_s16, 4  ;;  %s27_s17 = int_to_ptr.vmem [resolvable:$true] %s26_s17 }
   0x6   :  { %29 = dma.hbm_to_vmem [thread:$0]  %s25_s14, 128, %s27_s17, [#allocation3]  }
   0x7   :  { %209 = dma.done.wait [#allocation5], 16  }
   0x8   :  { %210 = vsyncadd [#allocation5], 4294967280 }
   0x9   :  { %211 = dma.done.wait [#allocation3], 128  }
   0xa   :  { %212 = vsyncadd [#allocation3], 4294967168 }
   0xb   :  { %38 = sfence }
   0xc   :  { %s40_s18 = sld [smem:[#allocation2]]  ;;  %v39_v0 = vld [vmem:[#allocation6] sm:$0xff]  ;;  %s217_s7 = smov [#allocation7]  }
   0xd   :  { %s128_s19 = sld [smem:[#allocation2 + $0x6]]  ;;  %s115_s8 = sshll.u32 %s217_s7, 4  ;;  %s116_s8 = int_to_ptr.vmem [resolvable:$true] %s115_s8 }
   0xe   :  { %s129_s0 = sld [smem:[#allocation2 + $0xc]]  ;;  %s117_s11 = sshll.u32 %s250_s2, 4  ;;  %s118_s11 = int_to_ptr.hbm [resolvable:$true] %s117_s11 }
   0xf   :  { %s130_s20 = sld [smem:[#allocation2 + $0x1]] }
  0x10   :  { %s131_s21 = sld [smem:[#allocation2 + $0x7]] }
  0x11   :  { %s132_s22 = sld [smem:[#allocation2 + $0xd]] }
  0x12   :  { %v41_v1 = vstv %s40_s18  ;;  %s133_s1 = sld [smem:[#allocation2 + $0x2]] }
  0x13   :  { %v42_v2 = vmul.f32 %v41_v1, %v39_v0  ;;  %v44_v3 = vstv %s128_s19  ;;  %s134_s23 = sld [smem:[#allocation2 + $0x8]] }
  0x14   :  { %s239_s24 = sld [smem:[#allocation2 + $0xe]]  ;;  %v48_v9 = vstv %s129_s0 }
  0x15   :  { %v45_v4 = vadd.f32 %v44_v3, %v42_v2  ;;  %v52_v5 = vstv %s130_s20  ;;  %s136_s25 = sld [smem:[#allocation2 + $0x3]] }
  0x16   :  { %v53_v6 = vmul.f32 %v52_v5, %v39_v0  ;;  %v55_v7 = vstv %s131_s21  ;;  %s137_s26 = sld [smem:[#allocation2 + $0x9]] }
  0x17   :  { %v46_v8 = vmax.f32 %v45_v4, 0.0  ;;  %s241_s27 = sld [smem:[#allocation2 + $0xf]]  ;;  %v59_v12 = vstv %s132_s22 }
  0x18   :  { %v56_v10 = vadd.f32 %v55_v7, %v53_v6  ;;  %v63_v11 = vstv %s133_s1  ;;  %s139_s28 = sld [smem:[#allocation2 + $0x4]] }
  0x19   :  { %v64_v13 = vmul.f32 %v63_v11, %v39_v0  ;;  %v66_v14 = vstv %s134_s23  ;;  %s140_s29 = sld [smem:[#allocation2 + $0xa]]  ;;  %v49_v15 = vmul.f32 %v48_v9, %v46_v8 }
  0x1a   :  { %v57_v16 = vmax.f32 %v56_v10, 0.0  ;;  %s141_s30 = sld [smem:[#allocation2 + $0x10]]  ;;  %v70_v20 = vstv %s239_s24 }
  0x1b   :  { %v67_v17 = vadd.f32 %v66_v14, %v64_v13  ;;  %v74_v18 = vstv %s136_s25  ;;  %s142_s3 = sld [smem:[#allocation2 + $0x5]] }
  0x1c   :  { %v60_v19 = vmul.f32 %v59_v12, %v57_v16  ;;  %v75_v21 = vmul.f32 %v74_v18, %v39_v0  ;;  %v77_v22 = vstv %s137_s26  ;;  %s143_s4 = sld [smem:[#allocation2 + $0xb]] }
  0x1d   :  { %v68_v23 = vmax.f32 %v67_v17, 0.0  ;;  %s144_s5 = sld [smem:[#allocation2 + $0x11]]  ;;  %v81_v28 = vstv %s241_s27 }
  0x1e   :  { %v61_v24 = vadd.f32 %v60_v19, %v49_v15  ;;  %v78_v25 = vadd.f32 %v77_v22, %v75_v21  ;;  %v85_v26 = vstv %s139_s28  ;;  %s145_s6 = sld [smem:[#allocation2 + $0x12]] }
  0x1f   :  { %v71_v27 = vmul.f32 %v70_v20, %v68_v23  ;;  %v86_v29 = vmul.f32 %v85_v26, %v39_v0  ;;  %v88_v30 = vstv %s140_s29 }
  0x20   :  { %v79_v31 = vmax.f32 %v78_v25, 0.0  ;;  %v92_v36 = vstv %s141_s30 }
  0x21   :  { %v72_v32 = vadd.f32 %v71_v27, %v61_v24  ;;  %v89_v33 = vadd.f32 %v88_v30, %v86_v29  ;;  %v96_v34 = vstv %s142_s3 }
  0x22   :  { %v82_v35 = vmul.f32 %v81_v28, %v79_v31  ;;  %v97_v37 = vmul.f32 %v96_v34, %v39_v0  ;;  %v99_v38 = vstv %s143_s4 }
  0x23   :  { %v90_v39 = vmax.f32 %v89_v33, 0.0  ;;  %v103_v43 = vstv %s144_s5 }
  0x24   :  { %v83_v40 = vadd.f32 %v82_v35, %v72_v32  ;;  %v100_v41 = vadd.f32 %v99_v38, %v97_v37  ;;  %v107_v47 = vstv %s145_s6 }
  0x25   :  { %v93_v42 = vmul.f32 %v92_v36, %v90_v39 }
  0x26   :  { %v101_v44 = vmax.f32 %v100_v41, 0.0 }
  0x27   :  { %v94_v45 = vadd.f32 %v93_v42, %v83_v40 }
  0x28   :  { %v104_v46 = vmul.f32 %v103_v43, %v101_v44 }
  0x2a   :  { %v105_v48 = vadd.f32 %v104_v46, %v94_v45 }
  0x2c   :  { %v108_v49 = vadd.f32 %v107_v47, %v105_v48 }
  0x2e   :  { %109 = vst [vmem:[#allocation7] sm:$0xff] %v108_v49 }
  0x2f   :  { %120 = dma.vmem_to_hbm [thread:$0]  %s116_s8, 128, %s118_s11, [#allocation4]  }
  0x30   :  { %213 = dma.done.wait [#allocation4], 128  }
  0x31   :  { %214 = vsyncadd [#allocation4], 4294967168 }
  0x32   :  { %125 = vsyncpa [#allocation3], 1 }
  0x33   :  { %126 = vsyncpa [#allocation4], 1 }
  0x34   :  { %127 = vsyncpa [#allocation5], 1 }

</bundles_post_ra>
